<compile_context>
chip_gen: v7x
topology: tpu7x:2x2x1
jax: 0.10.0
libtpu: 0.0.40
codegen_flags: <defaults>
</compile_context>

<pallas_src>
import jax
import jax.numpy as jnp
from jax import lax
from jax.experimental import pallas as pl
from jax.experimental.pallas import tpu as pltpu

NUM_CLASSES = 10
FEAT_DIM = 2 * 256   # module does feat_dim * 256
BATCH = 8


def _center_loss_kernel(x_ref, c_ref, lab_ref, out_ref):
    # x_ref: VMEM (B, D); c_ref: VMEM (C, D); lab_ref: VMEM (B, 1) int32;
    # out_ref: SMEM (1,) f32
    x = x_ref[...].astype(jnp.float32)   # (B, D)
    c = c_ref[...].astype(jnp.float32)   # (C, D)

    B, D = x.shape
    C = c.shape[0]

    # ||x_i||^2 per row (cross-lane reduce -> one value per sublane).
    x_sq = jnp.sum(x * x, axis=1, keepdims=True)                        # (B, 1)

    # ||c_j||^2 directly in lane-major (1, C) layout via the MXU:
    #   ones(1, D) @ (c*c)^T  -- avoids the (C, 1) -> (1, C) relayout/transpose.
    c_sq_row = lax.dot_general(
        jnp.ones((1, D), jnp.float32), c * c,
        (((1,), (1,)), ((), ())),
        preferred_element_type=jnp.float32)                             # (1, C)

    # x @ centers^T on the MXU (contract over feat_dim).
    xc = lax.dot_general(
        x, c, (((1,), (1,)), ((), ())),
        preferred_element_type=jnp.float32)                             # (B, C)

    distmat = x_sq + c_sq_row - 2.0 * xc                                # (B, C)

    # mask[i, j] = (labels[i] == j): one vectorized compare against a class iota.
    classes = lax.broadcasted_iota(jnp.int32, (B, C), 1)                # (B, C)
    mask = lab_ref[...] == classes                                      # (B,1)==(B,C)

    # Matches torch: (distmat * mask).clamp(min=1e-12, max=1e12).sum() / B
    # (masked-out zeros intentionally become 1e-12 each, like the reference).
    dist = jnp.clip(jnp.where(mask, distmat, 0.0), 1e-12, 1e12)
    out_ref[0] = jnp.sum(dist) / jnp.float32(B)


def center_loss(x, centers, labels):
    """x: (B, D), centers: (C, D), labels: (B,) int -> scalar f32 loss."""
    B, D = x.shape
    C = centers.shape[0]
    lab_col = labels.astype(jnp.int32).reshape(B, 1)   # free relayout under jit

    bytes_in = (x.size * x.dtype.itemsize
                + centers.size * centers.dtype.itemsize
                + B * 4)
    out = pl.pallas_call(
        _center_loss_kernel,
        out_shape=jax.ShapeDtypeStruct((1,), jnp.float32),
        in_specs=[
            pl.BlockSpec(memory_space=pltpu.MemorySpace.VMEM),   # x
            pl.BlockSpec(memory_space=pltpu.MemorySpace.VMEM),   # centers
            pl.BlockSpec(memory_space=pltpu.MemorySpace.VMEM),   # labels (B, 1)
        ],
        out_specs=pl.BlockSpec(memory_space=pltpu.MemorySpace.SMEM),
        cost_estimate=pl.CostEstimate(
            flops=2 * B * C * D + 2 * C * D,
            transcendentals=0,
            bytes_accessed=bytes_in + 4),
    )(x, centers, lab_col)
    return out[0]


def center_loss_ref(x, centers, labels):
    """Pure-JAX reference mirroring the PyTorch forward exactly."""
    B = x.shape[0]
    C = centers.shape[0]
    xf = x.astype(jnp.float32)
    cf = centers.astype(jnp.float32)
    distmat = (jnp.sum(xf ** 2, axis=1, keepdims=True)
               + jnp.sum(cf ** 2, axis=1, keepdims=True).T
               - 2.0 * xf @ cf.T)
    mask = (labels[:, None] == jnp.arange(C)[None, :]).astype(jnp.float32)
    dist = jnp.clip(distmat * mask, 1e-12, 1e12)
    return jnp.sum(dist) / B


if __name__ == "__main__":
    key = jax.random.PRNGKey(0)
    kx, kc, kl = jax.random.split(key, 3)

    # deterministic "parameter" init: centers ~ N(0, 1), shape (num_classes, feat_dim)
    centers = jax.random.normal(kc, (NUM_CLASSES, FEAT_DIM), dtype=jnp.float32)
    x = jax.random.normal(kx, (BATCH, FEAT_DIM), dtype=jnp.float32)
    labels = jax.random.randint(kl, (BATCH,), 0, NUM_CLASSES, dtype=jnp.int32)

    loss_fn = jax.jit(center_loss)          # keep the kernel fused under jit
    loss = jax.block_until_ready(loss_fn(x, centers, labels))
    ref = jax.block_until_ready(center_loss_ref(x, centers, labels))

    assert jnp.allclose(loss, ref, rtol=1e-5, atol=1e-5), (loss, ref)
    print("KERNEL_OK")
</pallas_src>

<mosaic_0001>
module attributes {stable_mosaic.version = 11 : i64} {
  func.func @_center_loss_kernel(%arg0: memref<8x512xf32, #tpu.memory_space<vmem>>, %arg1: memref<10x512xf32, #tpu.memory_space<vmem>>, %arg2: memref<8x1xi32, #tpu.memory_space<vmem>>, %arg3: memref<1xf32, #tpu.memory_space<smem>>) attributes {dimension_semantics = [], scalar_prefetch = 0 : i64, scratch_operands = 0 : i64, tpu.core_type = #tpu.core_type<tc>} {
    %c0 = arith.constant 0 : index
    %c0_0 = arith.constant 0 : index
    %0 = vector.load %arg0[%c0, %c0_0] : memref<8x512xf32, #tpu.memory_space<vmem>>, vector<8x512xf32>
    %c0_1 = arith.constant 0 : index
    %c0_2 = arith.constant 0 : index
    %1 = vector.load %arg1[%c0_1, %c0_2] : memref<10x512xf32, #tpu.memory_space<vmem>>, vector<10x512xf32>
    %2 = arith.mulf %0, %0 : vector<8x512xf32>
    %cst = arith.constant dense<0.000000e+00> : vector<8xf32>
    %3 = vector.multi_reduction <add>, %2, %cst [1] : vector<8x512xf32> to vector<8xf32>
    %4 = vector.shape_cast %3 : vector<8xf32> to vector<8x1xf32>
    %cst_3 = arith.constant 1.000000e+00 : f32
    %5 = vector.broadcast %cst_3 : f32 to vector<1x512xf32>
    %6 = arith.mulf %1, %1 : vector<10x512xf32>
    %cst_4 = arith.constant dense<0.000000e+00> : vector<1x10xf32>
    %7 = tpu.matmul %5, %6, %cst_4 {dimension_numbers = #tpu.dot_dimension_numbers<[1], [1], [0], [0], [0, 0, 1, 0], [], []>} : vector<1x512xf32>, vector<10x512xf32>, vector<1x10xf32> -> vector<1x10xf32>
    %cst_5 = arith.constant dense<0.000000e+00> : vector<8x10xf32>
    %8 = tpu.matmul %0, %1, %cst_5 {dimension_numbers = #tpu.dot_dimension_numbers<[1], [1], [0], [0], [0, 0, 1, 0], [], []>} : vector<8x512xf32>, vector<10x512xf32>, vector<8x10xf32> -> vector<8x10xf32>
    %9 = vector.broadcast %4 : vector<8x1xf32> to vector<8x10xf32>
    %10 = vector.broadcast %7 : vector<1x10xf32> to vector<8x10xf32>
    %11 = arith.addf %9, %10 : vector<8x10xf32>
    %cst_6 = arith.constant 2.000000e+00 : f32
    %12 = vector.broadcast %cst_6 : f32 to vector<8x10xf32>
    %13 = arith.mulf %12, %8 : vector<8x10xf32>
    %14 = arith.subf %11, %13 : vector<8x10xf32>
    %15 = tpu.iota {dimensions = array<i32: 1>} : vector<8x10xi32>
    %c0_7 = arith.constant 0 : index
    %c0_8 = arith.constant 0 : index
    %16 = vector.load %arg2[%c0_7, %c0_8] : memref<8x1xi32, #tpu.memory_space<vmem>>, vector<8x1xi32>
    %17 = vector.broadcast %16 : vector<8x1xi32> to vector<8x10xi32>
    %18 = arith.cmpi eq, %17, %15 : vector<8x10xi32>
    %cst_9 = arith.constant 0.000000e+00 : f32
    %19 = vector.broadcast %cst_9 : f32 to vector<8x10xf32>
    %20 = arith.select %18, %14, %19 : vector<8x10xi1>, vector<8x10xf32>
    %cst_10 = arith.constant 9.99999996E-13 : f32
    %cst_11 = arith.constant 9.99999995E+11 : f32
    %21 = vector.broadcast %cst_10 : f32 to vector<8x10xf32>
    %22 = arith.maximumf %21, %20 : vector<8x10xf32>
    %23 = vector.broadcast %cst_11 : f32 to vector<8x10xf32>
    %24 = arith.minimumf %23, %22 : vector<8x10xf32>
    %25 = vector.shape_cast %24 : vector<8x10xf32> to vector<1x8x10xf32>
    %cst_12 = arith.constant dense<0.000000e+00> : vector<1xf32>
    %26 = vector.multi_reduction <add>, %25, %cst_12 [1, 2] : vector<1x8x10xf32> to vector<1xf32>
    %27 = vector.shape_cast %26 : vector<1xf32> to vector<1x1x1xf32>
    %28 = vector.extract %27[0, 0, 0] : f32 from vector<1x1x1xf32>
    %cst_13 = arith.constant 8.000000e+00 : f32
    %29 = arith.divf %28, %cst_13 : f32
    %c0_14 = arith.constant 0 : index
    %30 = memref.load %arg3[%c0_14] : memref<1xf32, #tpu.memory_space<smem>>
    memref.store %29, %arg3[%c0_14] : memref<1xf32, #tpu.memory_space<smem>>
    return
  }
}

</mosaic_0001>

<bundles_post_ra>
// kernel: center_loss.1
= control target key start
LH: loop header
LB: loop body
LE: loop exit
PB: predicated region body
PF: predicated region fallthrough
CT: control target
= control target key end

     0   :  { %8 = vsyncpa [#allocation3], 0  ;;  %s561_s0 = inlined_call_operand.hbm [shape: f32[8,512], index: 0, kind: input, shape index: {}]   ;;  %s562_s1 = inlined_call_operand.hbm [shape: f32[10,512], index: 1, kind: input, shape index: {}]   ;;  %s563_s2 = inlined_call_operand.vmem [shape: s32[8,1], index: 2, kind: input, shape index: {}]   ;;  %s564_s3 = inlined_call_operand.hbm [shape: f32[1], index: 3, kind: output, shape index: {}]  }
   0x1   :  { %9 = vsyncpa [#allocation6], 0 }
   0x2   :  { %10 = vsyncpa [#allocation4], 0  ;;  %s488_s12 = smov [#allocation2]   ;;  %s489_s14 = smov [#allocation5]  }
   0x3   :  { %s17_s13 = sshll.u32 %s488_s12, 4  ;;  %s26_s15 = sshll.u32 %s489_s14, 4  ;;  %s18_s13 = int_to_ptr.vmem [resolvable:$true] %s17_s13  ;;  %s515_s15 = int_to_ptr.vmem [resolvable:$true] %s26_s15 }
   0x4   :  { %s428_s18 = scalar_lea.hbm %s561_s0, 512 }
   0x5   :  { %p429_p0 = scmp.ne.s32.totalorder %s561_s0, %s428_s18  ;;  %p432_p1 = scmp.lt.u32.totalorder %s428_s18, %s561_s0 }
   0x7   :  { %p434_p2 = pnand %p432_p1, %p429_p0 }
   0x9   :  { %437 = shalt.err (!%p434_p2)
}
   0xa   :  { %s438_s23 = scalar_lea.vmem %s18_s13, 512  ;;  %p443_p4 = scmp.lt.s32.totalorder %s18_s13, %s18_s13 }
   0xb   :  { %p439_p3 = scmp.ne.s32.totalorder %s18_s13, %s438_s23  ;;  %p444_p5 = scmp.lt.s32.totalorder %s438_s23, %s438_s23 }
   0xd   :  { %p445_p6 = por %p444_p5, %p443_p4 }
   0xf   :  { %p446_p7 = pnand %p445_p6, %p439_p3 }
  0x11   :  { %449 = shalt.err (!%p446_p7)
}
  0x12   :  { %20 = dma.hbm_to_vmem [thread:$0]  %s561_s0, 512, %s18_s13, [#allocation3]  }
  0x13   :  { %s450_s28 = scalar_lea.hbm %s562_s1, 1024 }
  0x14   :  { %p451_p8 = scmp.ne.s32.totalorder %s562_s1, %s450_s28  ;;  %p454_p9 = scmp.lt.u32.totalorder %s450_s28, %s562_s1 }
  0x16   :  { %p456_p10 = pnand %p454_p9, %p451_p8 }
  0x18   :  { %459 = shalt.err (!%p456_p10)
}
  0x19   :  { %s460_s6 = scalar_lea.vmem %s515_s15, 1024  ;;  %p465_p12 = scmp.lt.s32.totalorder %s515_s15, %s515_s15 }
  0x1a   :  { %p461_p11 = scmp.ne.s32.totalorder %s515_s15, %s460_s6  ;;  %p466_p13 = scmp.lt.s32.totalorder %s460_s6, %s460_s6 }
  0x1c   :  { %p467_p0 = por %p466_p13, %p465_p12 }
  0x1e   :  { %p468_p1 = pnand %p467_p0, %p461_p11 }
  0x20   :  { %471 = shalt.err (!%p468_p1)
}
  0x21   :  { %s490_s0 = smov 512   ;;  %s491_s7 = smov 32  }
  0x22   :  { %32 = dma.hbm_to_vmem [thread:$0]  %s562_s1, 1024, %s515_s15, [#allocation6], %s490_s0, %s490_s0, %s491_s7  }
  0x23   :  { %482 = dma.done.wait [#allocation3], 512  }
  0x24   :  { %483 = vsyncadd [#allocation3], 4294966784 }
  0x25   :  { %484 = dma.done.wait [#allocation6], 1024  }
  0x26   :  { %485 = vsyncadd [#allocation6], 4294966272  ;;  %v492_v0 = vmov 1.0   ;;  %v493_v1 = vmov 0   ;;  %v46_v2 = vld [vmem:[#allocation5 + $0x8] sm:$0xff]  ;;  %v45_v4 = vld [vmem:[#allocation5] sm:$0xff]  ;;  %v350_v38 = vlaneseq }
  0x27   :  { %134 = vmatprep.mubr.f32.mxu0 %v492_v0  ;;  %427 = vset.pattern.permute.xlu0 %v493_v1  ;;  %v50_v3 = vld [vmem:[#allocation5 + $0x28] sm:$0x3]  ;;  %v49_v6 = vld [vmem:[#allocation5 + $0x20] sm:$0x3]  ;;  %v63_v7 = vmul.f32 %v46_v2, %v46_v2  ;;  %v62_v9 = vmul.f32 %v45_v4, %v45_v4  ;;  %v48_v16 = vld [vmem:[#allocation5 + $0x18] sm:$0xff]  ;;  %vm367_vm1 = vcmask 80896  }
  0x28   :  { %v406_v5 = vpack.c.bf16 %v50_v3, %v46_v2  ;;  %v67_v8 = vmul.f32 %v50_v3, %v50_v3  ;;  %v42_v10 = vld [vmem:[#allocation2 + $0x8] sm:$0xff]  ;;  %v41_v11 = vld [vmem:[#allocation2] sm:$0xff]  ;;  %v408_v12 = vpack.c.bf16 %v49_v6, %v45_v4  ;;  %v66_v13 = vmul.f32 %v49_v6, %v49_v6  ;;  %v52_v17 = vld [vmem:[#allocation5 + $0x38] sm:$0x3]  ;;  %s472_s14 = scalar_lea.hbm %s564_s3, 16 }
  0x29   :  { %v54_v14 = vmul.f32 %v42_v10, %v42_v10  ;;  %274 = vmatprep.mubr.f32.mxu1 %v42_v10  ;;  %v53_v15 = vmul.f32 %v41_v11, %v41_v11  ;;  %v410_v19 = vpack.c.bf16 %v52_v17, %v48_v16  ;;  %v47_v20 = vld [vmem:[#allocation5 + $0x10] sm:$0xff]  ;;  %v65_v22 = vmul.f32 %v48_v16, %v48_v16  ;;  %v44_v27 = vld [vmem:[#allocation2 + $0x18] sm:$0xff]  ;;  %v359_v37 = vld [vmem:[%s563_s2] sm:$0xff]  ;;  %p473_p2 = scmp.ne.s32.totalorder %s564_s3, %s472_s14  ;;  %p476_p3 = scmp.lt.u32.totalorder %s472_s14, %s564_s3 }
  0x2a   :  { %407 = vmatprep.subr.bf16.mxu1 %v406_v5  ;;  %v398_v18 = vpack.c.bf16 %v67_v8, %v63_v7  ;;  %v51_v21 = vld [vmem:[#allocation5 + $0x30] sm:$0x3]  ;;  %v69_v23 = vmul.f32 %v52_v17, %v52_v17  ;;  %v400_v24 = vpack.c.bf16 %v66_v13, %v62_v9  ;;  %v64_v29 = vmul.f32 %v47_v20, %v47_v20 }
  0x2b   :  { %409 = vmatpush1.bf16.xpose.msra.mxu1 %v408_v12  ;;  %v43_v25 = vld [vmem:[#allocation2 + $0x10] sm:$0xff]  ;;  %v68_v30 = vmul.f32 %v51_v21, %v51_v21  ;;  %v56_v31 = vmul.f32 %v44_v27, %v44_v27  ;;  %v57_v32 = vadd.f32 %v54_v14, %v53_v15  ;;  %v412_v33 = vpack.c.bf16 %v51_v21, %v47_v20  ;;  %p478_p4 = pnand %p476_p3, %p473_p2 }
  0x2c   :  { %399 = vmatprep.subr.bf16.mxu0 %v398_v18  ;;  %411 = vmatprep.subr.bf16.mxu1 %v410_v19  ;;  %v402_v26 = vpack.c.bf16 %v69_v23, %v65_v22  ;;  %v55_v28 = vmul.f32 %v43_v25, %v43_v25  ;;  %v351_v39 = vshrl.u32 %v350_v38, 7  ;;  %v358_v45 = vand.u32 127, %v350_v38 }
  0x2d   :  { %401 = vmatpush1.bf16.xpose.msra.mxu0 %v400_v24  ;;  %v404_v35 = vpack.c.bf16 %v68_v30, %v64_v29 }
  0x2e   :  { %403 = vmatprep.subr.bf16.mxu0 %v402_v26  ;;  %v58_v34 = vadd.f32 %v57_v32, %v55_v28  ;;  %v352_v41 = vsub.s32 0, %v351_v39 }
  0x30   :  { %v59_v36 = vadd.f32 %v58_v34, %v56_v31 }
  0x32   :  { %275 = vmatmul.mubr.f32.vlgmr.msra.gmra.mrb[0].mxu1 %v41_v11  ;;  %60 = vadd.xlane.f32.xlu0 %v59_v36 }
  0x33   :  { %413 = vmatpush1.bf16.xpose.msra.mxu1 %v412_v33  ;;  %344 = vmatprep.mubr.f32.mxu1 %v44_v27 }
  0x34   :  { %135 = vmatmul.mubr.f32.vlgmr.msra.gmra.mrb[0].mxu0 %v492_v0 }
  0x35   :  { %405 = vmatpush1.bf16.xpose.msra.mxu0 %v404_v35  ;;  %204 = vmatprep.mubr.f32.mxu0 %v492_v0 }
  0x3a   :  { %345 = vmatmul.mubr.f32.vlgmr.msra.gmra.mrb[0].mxu1 %v43_v25 }
  0x3c   :  { %205 = vmatmul.mubr.f32.vlgmr.msra.gmra.mrb[0].mxu0 %v492_v0 }
  0x48   :  { %361 = vperm.xlu0 %427, %v359_v37  }
  0xbf   :  { %v61_v40 = vpop.xlane.xlu0 %60 }
  0xc7   :  { %v362_v48 = vpop.permute.xlu0 %361 }
  0xc8   :  { %vm363_vm0 = vcmp.eq.s32.totalorder %v362_v48, %v358_v45 }
 0x10d   :  { %v346_v42 = vpop.f32.mrb[0].mxu1 }
 0x10e   :  { %v348_v43 = vpop.f32.mrb[1].mxu1  ;;  %v355_v49 = vmul.f32 2.0, %v346_v42 }
 0x10f   :  { %v206_v44 = vpop.f32.mrb[0].mxu0 }
 0x110   :  { %v353_v46 = vrot.slane %v206_v44, %v352_v41  ;;  %v208_v47 = vpop.f32.mrb[1].mxu0 }
 0x112   :  { %v354_v50 = vadd.f32 %v353_v46, %v61_v40 }
 0x114   :  { %v356_v51 = vsub.f32 %v354_v50, %v355_v49 }
 0x116   :  { %v364_v52 = vsel %vm363_vm0, %v356_v51, 0.0 }
 0x117   :  { %v365_v53 = vmax.f32 %v364_v52, 1e-12 }
 0x119   :  { %v366_v54 = vmin.f32 %v365_v53, 1e+12 }
 0x11b   :  { %v368_v55 = vsel %vm367_vm1, %v366_v54, 0.0 }
 0x11c   :  { %369 = vadd.xlane.f32.xlu1 %v368_v55 }
 0x1a9   :  { %v370_v56 = vpop.xlane.xlu1 %369 }
 0x1aa   :  { %v371_v57 = vrot.slane %v370_v56, 4 }
 0x1ac   :  { %v372_v58 = vadd.f32 %v371_v57, %v370_v56 }
 0x1ae   :  { %v373_v59 = vrot.slane %v372_v58, 2 }
 0x1b0   :  { %v374_v60 = vadd.f32 %v373_v59, %v372_v58 }
 0x1b2   :  { %v375_v61 = vrot.slane %v374_v60, 1 }
 0x1b4   :  { %v376_v62 = vadd.f32 %v375_v61, %v374_v60 }
 0x1b6   :  { %418 = vpush %v376_v62 }
 0x1e7   :  { %s419_s2 = spop %418 }
 0x1e8   :  { %s380_s11 = smul.f32 0.125, %s419_s2 }
 0x1ea   :  { %382 = sst [smem:[#allocation7]] %s380_s11 }
 0x1eb   :  { %481 = shalt.err (!%p478_p4)
}
 0x1ec   :  { %s494_s19 = smov [#allocation7]  }
 0x1ed   :  { %390 = dma.smem_to_hbm %s494_s19, 16, %s564_s3, [#allocation4]  }
 0x1ee   :  { %486 = dma.done.wait [#allocation4], 16  }
 0x1ef   :  { %487 = vsyncadd [#allocation4], 4294967280 }
 0x1f0   :  { %394 = sfence }
 0x1f1   :  { %395 = vsyncpa [#allocation3], 1 }
 0x1f2   :  { %396 = vsyncpa [#allocation6], 1 }
 0x1f3   :  { %397 = vsyncpa [#allocation4], 1 }

</bundles_post_ra>
